<compile_context>
chip_gen: v7x
topology: tpu7x:2x2x1
jax: 0.10.0
libtpu: 0.0.40
codegen_flags: <defaults>
</compile_context>

<pallas_src>
import jax
import jax.numpy as jnp
from jax.experimental import pallas as pl
from jax.experimental.pallas import tpu as pltpu

NEG_SLOPE = 0.01  # nn.LeakyReLU() default
LANE = 128        # vreg lane width
SUBLANE = 8       # vreg sublane count


def _leaky_relu(v):
    return jnp.where(v >= 0, v, NEG_SLOPE * v)


def _round_up(n, m):
    return (n + m - 1) // m * m


def mlp_kernel(x_ref, w1_ref, b1_ref, w2_ref, b2_ref, w3_ref, b3_ref,
               wo_ref, bo_ref, o_ref):
    cdt = w1_ref.dtype  # compute dtype (f32 or bf16); accumulation is f32
    # fc1 + LeakyReLU   (dropout = identity in eval mode)
    h = jnp.dot(x_ref[...], w1_ref[...],
                preferred_element_type=jnp.float32) + b1_ref[...]
    h = _leaky_relu(h).astype(cdt)
    # fc2 + LeakyReLU
    h = jnp.dot(h, w2_ref[...],
                preferred_element_type=jnp.float32) + b2_ref[...]
    h = _leaky_relu(h).astype(cdt)
    # fc3 + LeakyReLU (kept in f32: no further MXU matmul)
    h = jnp.dot(h, w3_ref[...],
                preferred_element_type=jnp.float32) + b3_ref[...]
    h = _leaky_relu(h)
    # output layer (out_features = 1): broadcast-multiply by the (1, hp) weight
    # row and reduce over lanes (VPU + XLU; both off the MXU critical path),
    # then store a narrow (TM, 1) block.
    out = jnp.sum(h * wo_ref[...], axis=-1, keepdims=True) + bo_ref[...]
    o_ref[...] = out.astype(o_ref.dtype)


def feedforward_nn(x, params, *, compute_dtype=jnp.float32, tile_m=512):
    """Fused forward pass of FeedForwardNN.

    x: (B, input_dim) f32.  params: list of (W, b) with W shaped
    (in_features, out_features) (transpose of nn.Linear.weight) at the
    logical sizes input_dim->100->100->100->1.  Returns (B, 1) f32.
    """
    (w1, b1), (w2, b2), (w3, b3), (wo, bo) = params
    B, in_dim = x.shape
    hidden = w1.shape[1]
    hp = _round_up(hidden, LANE)  # 100 -> 128

    def pad2(a, rows, cols):
        return jnp.pad(a, ((0, rows - a.shape[0]), (0, cols - a.shape[1])))

    # Zero-pad hidden width.  Padded hidden units get zero weight + zero bias,
    # leaky_relu(0) == 0, and the padded output-weight lanes are zero, so the
    # result is bit-exact vs. the unpadded network (in f32).
    w1p = pad2(w1, in_dim, hp).astype(compute_dtype)
    w2p = pad2(w2, hp, hp).astype(compute_dtype)
    w3p = pad2(w3, hp, hp).astype(compute_dtype)
    wop = pad2(wo.T, 1, hp).astype(jnp.float32)      # (1, hp) row vector, f32
    b1p = pad2(b1, 1, hp).astype(jnp.float32)
    b2p = pad2(b2, 1, hp).astype(jnp.float32)
    b3p = pad2(b3, 1, hp).astype(jnp.float32)
    bop = bo.reshape(1, 1).astype(jnp.float32)

    # Batch tiling: TM capped so double-buffered x/out + resident weights +
    # the (TM, 128) f32 intermediates fit comfortably inside the scoped-VMEM
    # default on every chip (v5e/v6e/v7x).
    tm = min(tile_m, _round_up(B, SUBLANE))
    b_pad = _round_up(B, tm)
    xp = jnp.pad(x, ((0, b_pad - B), (0, 0))).astype(compute_dtype)
    grid = (b_pad // tm,)

    # Weights/biases: full-array blocks, constant index_map -> VMEM-resident.
    full = lambda a: pl.BlockSpec(a.shape, lambda i: (0,) * a.ndim)

    out = pl.pallas_call(
        mlp_kernel,
        out_shape=jax.ShapeDtypeStruct((b_pad, 1), jnp.float32),
        grid_spec=pltpu.PrefetchScalarGridSpec(
            num_scalar_prefetch=0,
            grid=grid,
            in_specs=[pl.BlockSpec((tm, in_dim), lambda i: (i, 0)),
                      full(w1p), full(b1p),
                      full(w2p), full(b2p),
                      full(w3p), full(b3p),
                      full(wop), full(bop)],
            out_specs=pl.BlockSpec((tm, 1), lambda i: (i, 0)),
        ),
        compiler_params=pltpu.CompilerParams(
            dimension_semantics=("parallel",)),
    )(xp, w1p, b1p, w2p, b2p, w3p, b3p, wop, bop)

    return out[:B]


def init_params(key, input_dim, hidden=100):
    """Deterministic init matching nn.Linear shapes (stored transposed)."""
    dims = [(input_dim, hidden), (hidden, hidden), (hidden, hidden), (hidden, 1)]
    params = []
    for (fan_in, fan_out) in dims:
        key, kw, kb = jax.random.split(key, 3)
        bound = 1.0 / jnp.sqrt(fan_in)  # PyTorch default U(-1/sqrt(in), 1/sqrt(in))
        w = jax.random.uniform(kw, (fan_in, fan_out), jnp.float32, -bound, bound)
        b = jax.random.uniform(kb, (1, fan_out), jnp.float32, -bound, bound)
        params.append((w, b))
    return params


def reference_forward(x, params):
    h = x
    for i, (w, b) in enumerate(params):
        h = h @ w + b
        if i < len(params) - 1:
            h = jnp.where(h >= 0, h, NEG_SLOPE * h)
    return h


if __name__ == "__main__":
    key = jax.random.PRNGKey(0)
    kx, kp = jax.random.split(key)

    B, INPUT_DIM = 8, 16
    x = jax.random.normal(kx, (B, INPUT_DIM), jnp.float32)
    params = init_params(kp, INPUT_DIM)

    out = feedforward_nn(x, params)            # f32 path: bit-exact padding
    out = jax.block_until_ready(out)

    ref = reference_forward(x, params)
    assert out.shape == (B, 1), out.shape
    assert jnp.allclose(out, ref, atol=1e-5, rtol=1e-5), "mismatch vs reference"

    print("KERNEL_OK")
</pallas_src>

<mosaic_0001>
module attributes {stable_mosaic.version = 11 : i64} {
  func.func @mlp_kernel(%arg0: i32, %arg1: memref<8x16xf32, #tpu.memory_space<vmem>>, %arg2: memref<16x128xf32, #tpu.memory_space<vmem>>, %arg3: memref<1x128xf32, #tpu.memory_space<vmem>>, %arg4: memref<128x128xf32, #tpu.memory_space<vmem>>, %arg5: memref<1x128xf32, #tpu.memory_space<vmem>>, %arg6: memref<128x128xf32, #tpu.memory_space<vmem>>, %arg7: memref<1x128xf32, #tpu.memory_space<vmem>>, %arg8: memref<1x128xf32, #tpu.memory_space<vmem>>, %arg9: memref<1x1xf32, #tpu.memory_space<vmem>>, %arg10: memref<8x1xf32, #tpu.memory_space<vmem>>) attributes {dimension_semantics = [#tpu.dimension_semantics<parallel>], iteration_bounds = array<i64: 1>, scalar_prefetch = 0 : i64, scratch_operands = 0 : i64, tpu.core_type = #tpu.core_type<tc>, window_params = [{transform_indices = @transform_0, window_bounds = array<i64: 8, 16>}, {pipeline_mode = #tpu.pipeline_mode<synchronous>, transform_indices = @transform_1, window_bounds = array<i64: 16, 128>}, {pipeline_mode = #tpu.pipeline_mode<synchronous>, transform_indices = @transform_2, window_bounds = array<i64: 1, 128>}, {pipeline_mode = #tpu.pipeline_mode<synchronous>, transform_indices = @transform_3, window_bounds = array<i64: 128, 128>}, {pipeline_mode = #tpu.pipeline_mode<synchronous>, transform_indices = @transform_4, window_bounds = array<i64: 1, 128>}, {pipeline_mode = #tpu.pipeline_mode<synchronous>, transform_indices = @transform_5, window_bounds = array<i64: 128, 128>}, {pipeline_mode = #tpu.pipeline_mode<synchronous>, transform_indices = @transform_6, window_bounds = array<i64: 1, 128>}, {pipeline_mode = #tpu.pipeline_mode<synchronous>, transform_indices = @transform_7, window_bounds = array<i64: 1, 128>}, {pipeline_mode = #tpu.pipeline_mode<synchronous>, transform_indices = @transform_8, window_bounds = array<i64: 1, 1>}, {transform_indices = @transform_9, window_bounds = array<i64: 8, 1>}]} {
    %c0 = arith.constant 0 : index
    %c0_0 = arith.constant 0 : index
    %0 = vector.load %arg1[%c0, %c0_0] : memref<8x16xf32, #tpu.memory_space<vmem>>, vector<8x16xf32>
    %c0_1 = arith.constant 0 : index
    %c0_2 = arith.constant 0 : index
    %1 = vector.load %arg2[%c0_1, %c0_2] : memref<16x128xf32, #tpu.memory_space<vmem>>, vector<16x128xf32>
    %cst = arith.constant dense<0.000000e+00> : vector<8x128xf32>
    %2 = tpu.matmul %0, %1, %cst {dimension_numbers = #tpu.dot_dimension_numbers<[1], [0], [0], [1], [0, 0, 1, 1], [], []>} : vector<8x16xf32>, vector<16x128xf32>, vector<8x128xf32> -> vector<8x128xf32>
    %c0_3 = arith.constant 0 : index
    %c0_4 = arith.constant 0 : index
    %3 = vector.load %arg3[%c0_3, %c0_4] : memref<1x128xf32, #tpu.memory_space<vmem>>, vector<1x128xf32>
    %4 = vector.broadcast %3 : vector<1x128xf32> to vector<8x128xf32>
    %5 = arith.addf %2, %4 : vector<8x128xf32>
    %cst_5 = arith.constant 0.000000e+00 : f32
    %6 = vector.broadcast %cst_5 : f32 to vector<8x128xf32>
    %7 = arith.cmpf oge, %5, %6 : vector<8x128xf32>
    %cst_6 = arith.constant 0.00999999977 : f32
    %8 = vector.broadcast %cst_6 : f32 to vector<8x128xf32>
    %9 = arith.mulf %8, %5 : vector<8x128xf32>
    %10 = arith.select %7, %5, %9 : vector<8x128xi1>, vector<8x128xf32>
    %c0_7 = arith.constant 0 : index
    %c0_8 = arith.constant 0 : index
    %11 = vector.load %arg4[%c0_7, %c0_8] : memref<128x128xf32, #tpu.memory_space<vmem>>, vector<128x128xf32>
    %cst_9 = arith.constant dense<0.000000e+00> : vector<8x128xf32>
    %12 = tpu.matmul %10, %11, %cst_9 {dimension_numbers = #tpu.dot_dimension_numbers<[1], [0], [0], [1], [0, 0, 1, 1], [], []>} : vector<8x128xf32>, vector<128x128xf32>, vector<8x128xf32> -> vector<8x128xf32>
    %c0_10 = arith.constant 0 : index
    %c0_11 = arith.constant 0 : index
    %13 = vector.load %arg5[%c0_10, %c0_11] : memref<1x128xf32, #tpu.memory_space<vmem>>, vector<1x128xf32>
    %14 = vector.broadcast %13 : vector<1x128xf32> to vector<8x128xf32>
    %15 = arith.addf %12, %14 : vector<8x128xf32>
    %cst_12 = arith.constant 0.000000e+00 : f32
    %16 = vector.broadcast %cst_12 : f32 to vector<8x128xf32>
    %17 = arith.cmpf oge, %15, %16 : vector<8x128xf32>
    %cst_13 = arith.constant 0.00999999977 : f32
    %18 = vector.broadcast %cst_13 : f32 to vector<8x128xf32>
    %19 = arith.mulf %18, %15 : vector<8x128xf32>
    %20 = arith.select %17, %15, %19 : vector<8x128xi1>, vector<8x128xf32>
    %c0_14 = arith.constant 0 : index
    %c0_15 = arith.constant 0 : index
    %21 = vector.load %arg6[%c0_14, %c0_15] : memref<128x128xf32, #tpu.memory_space<vmem>>, vector<128x128xf32>
    %cst_16 = arith.constant dense<0.000000e+00> : vector<8x128xf32>
    %22 = tpu.matmul %20, %21, %cst_16 {dimension_numbers = #tpu.dot_dimension_numbers<[1], [0], [0], [1], [0, 0, 1, 1], [], []>} : vector<8x128xf32>, vector<128x128xf32>, vector<8x128xf32> -> vector<8x128xf32>
    %c0_17 = arith.constant 0 : index
    %c0_18 = arith.constant 0 : index
    %23 = vector.load %arg7[%c0_17, %c0_18] : memref<1x128xf32, #tpu.memory_space<vmem>>, vector<1x128xf32>
    %24 = vector.broadcast %23 : vector<1x128xf32> to vector<8x128xf32>
    %25 = arith.addf %22, %24 : vector<8x128xf32>
    %cst_19 = arith.constant 0.000000e+00 : f32
    %26 = vector.broadcast %cst_19 : f32 to vector<8x128xf32>
    %27 = arith.cmpf oge, %25, %26 : vector<8x128xf32>
    %cst_20 = arith.constant 0.00999999977 : f32
    %28 = vector.broadcast %cst_20 : f32 to vector<8x128xf32>
    %29 = arith.mulf %28, %25 : vector<8x128xf32>
    %30 = arith.select %27, %25, %29 : vector<8x128xi1>, vector<8x128xf32>
    %c0_21 = arith.constant 0 : index
    %c0_22 = arith.constant 0 : index
    %31 = vector.load %arg8[%c0_21, %c0_22] : memref<1x128xf32, #tpu.memory_space<vmem>>, vector<1x128xf32>
    %32 = vector.broadcast %31 : vector<1x128xf32> to vector<8x128xf32>
    %33 = arith.mulf %30, %32 : vector<8x128xf32>
    %cst_23 = arith.constant dense<0.000000e+00> : vector<8xf32>
    %34 = vector.multi_reduction <add>, %33, %cst_23 [1] : vector<8x128xf32> to vector<8xf32>
    %35 = vector.shape_cast %34 : vector<8xf32> to vector<8x1xf32>
    %c0_24 = arith.constant 0 : index
    %c0_25 = arith.constant 0 : index
    %36 = vector.load %arg9[%c0_24, %c0_25] : memref<1x1xf32, #tpu.memory_space<vmem>>, vector<1x1xf32>
    %37 = vector.broadcast %36 : vector<1x1xf32> to vector<8x1xf32>
    %38 = arith.addf %35, %37 : vector<8x1xf32>
    %c0_26 = arith.constant 0 : index
    %c0_27 = arith.constant 0 : index
    %39 = vector.load %arg10[%c0_26, %c0_27] : memref<8x1xf32, #tpu.memory_space<vmem>>, vector<8x1xf32>
    tpu.vector_store %arg10[%c0_26, %c0_27], %38 {strides = array<i32>} : memref<8x1xf32, #tpu.memory_space<vmem>>, vector<8x1xf32>,
    return
  }
  func.func @transform_0(%arg0: i32) -> (i32, i32) {
    %c0_i32 = arith.constant 0 : i32
    %c0_i32_0 = arith.constant 0 : i32
    return %arg0, %c0_i32 : i32, i32
  }
  func.func @transform_1(%arg0: i32) -> (i32, i32) {
    %c0_i32 = arith.constant 0 : i32
    %c0_i32_0 = arith.constant 0 : i32
    %c0_i32_1 = arith.constant 0 : i32
    return %c0_i32, %c0_i32_0 : i32, i32
  }
  func.func @transform_2(%arg0: i32) -> (i32, i32) {
    %c0_i32 = arith.constant 0 : i32
    %c0_i32_0 = arith.constant 0 : i32
    %c0_i32_1 = arith.constant 0 : i32
    return %c0_i32, %c0_i32_0 : i32, i32
  }
  func.func @transform_3(%arg0: i32) -> (i32, i32) {
    %c0_i32 = arith.constant 0 : i32
    %c0_i32_0 = arith.constant 0 : i32
    %c0_i32_1 = arith.constant 0 : i32
    return %c0_i32, %c0_i32_0 : i32, i32
  }
  func.func @transform_4(%arg0: i32) -> (i32, i32) {
    %c0_i32 = arith.constant 0 : i32
    %c0_i32_0 = arith.constant 0 : i32
    %c0_i32_1 = arith.constant 0 : i32
    return %c0_i32, %c0_i32_0 : i32, i32
  }
  func.func @transform_5(%arg0: i32) -> (i32, i32) {
    %c0_i32 = arith.constant 0 : i32
    %c0_i32_0 = arith.constant 0 : i32
    %c0_i32_1 = arith.constant 0 : i32
    return %c0_i32, %c0_i32_0 : i32, i32
  }
  func.func @transform_6(%arg0: i32) -> (i32, i32) {
    %c0_i32 = arith.constant 0 : i32
    %c0_i32_0 = arith.constant 0 : i32
    %c0_i32_1 = arith.constant 0 : i32
    return %c0_i32, %c0_i32_0 : i32, i32
  }
  func.func @transform_7(%arg0: i32) -> (i32, i32) {
    %c0_i32 = arith.constant 0 : i32
    %c0_i32_0 = arith.constant 0 : i32
    %c0_i32_1 = arith.constant 0 : i32
    return %c0_i32, %c0_i32_0 : i32, i32
  }
  func.func @transform_8(%arg0: i32) -> (i32, i32) {
    %c0_i32 = arith.constant 0 : i32
    %c0_i32_0 = arith.constant 0 : i32
    %c0_i32_1 = arith.constant 0 : i32
    return %c0_i32, %c0_i32_0 : i32, i32
  }
  func.func @transform_9(%arg0: i32) -> (i32, i32) {
    %c0_i32 = arith.constant 0 : i32
    %c0_i32_0 = arith.constant 0 : i32
    return %arg0, %c0_i32 : i32, i32
  }
}

</mosaic_0001>

<bundles_post_ra>
// kernel: tpu_custom_call.1
= control target key start
LH: loop header
LB: loop body
LE: loop exit
PB: predicated region body
PF: predicated region fallthrough
CT: control target
= control target key end

     0   :  { %s821_s0 = inlined_call_operand.hbm [shape: f32[8,16], index: 0, kind: input, shape index: {}]   ;;  %s822_s1 = inlined_call_operand.hbm [shape: f32[16,128], index: 1, kind: input, shape index: {}]   ;;  %s823_s2 = inlined_call_operand.vmem [shape: f32[1,128], index: 2, kind: input, shape index: {}]   ;;  %s824_s3 = inlined_call_operand.hbm [shape: f32[128,128], index: 3, kind: input, shape index: {}]   ;;  %s825_s4 = inlined_call_operand.vmem [shape: f32[1,128], index: 4, kind: input, shape index: {}]   ;;  %s826_s5 = inlined_call_operand.hbm [shape: f32[128,128], index: 5, kind: input, shape index: {}]   ;;  %s827_s6 = inlined_call_operand.vmem [shape: f32[1,128], index: 6, kind: input, shape index: {}]   ;;  %s828_s7 = inlined_call_operand.vmem [shape: f32[1,128], index: 7, kind: input, shape index: {}]   ;;  %s829_s8 = inlined_call_operand.<no memory space> [shape: f32[1,1], index: 8, kind: input, shape index: {}]   ;;  %s830_s9 = inlined_call_operand.vmem [shape: f32[8,1], index: 9, kind: output, shape index: {}]  }
   0x1   :  { %v14_v0 = vstv %s829_s8 }
   0x2   :  { %15 = vst [vmem:[#allocation2] sm:$0x1] %v14_v0 }
   0x3   :  { %16 = vsyncpa [#allocation4], 0 }
   0x4   :  { %17 = vsyncpa [#allocation6], 0 }
   0x5   :  { %18 = vsyncpa [#allocation9], 0  ;;  %s667_s11 = smov [#allocation5]   ;;  %s573_s15 = scalar_lea.hbm %s822_s1, 256 }
   0x6   :  { %s34_s12 = sshll.u32 %s667_s11, 4  ;;  %p574_p0 = scmp.ne.s32.totalorder %s822_s1, %s573_s15  ;;  %s35_s12 = int_to_ptr.vmem [resolvable:$true] %s34_s12 }
   0x7   :  { %p577_p1 = scmp.lt.u32.totalorder %s573_s15, %s822_s1 }
   0x9   :  { %p579_p2 = pnand %p577_p1, %p574_p0 }
   0xb   :  { %582 = shalt.err (!%p579_p2)
}
   0xc   :  { %s583_s8 = scalar_lea.vmem %s35_s12, 256  ;;  %p588_p4 = scmp.lt.s32.totalorder %s35_s12, %s35_s12 }
   0xd   :  { %p584_p3 = scmp.ne.s32.totalorder %s35_s12, %s583_s8  ;;  %p589_p5 = scmp.lt.s32.totalorder %s583_s8, %s583_s8 }
   0xf   :  { %p590_p6 = por %p589_p5, %p588_p4 }
  0x11   :  { %p591_p7 = pnand %p590_p6, %p584_p3 }
  0x13   :  { %594 = shalt.err (!%p591_p7)
}
  0x14   :  { %s668_s20 = smov 128   ;;  %s669_s21 = smov 8  }
  0x15   :  { %40 = dma.hbm_to_vmem [thread:$0]  %s822_s1, 256, %s35_s12, [#allocation6], %s668_s20, %s668_s20, %s669_s21  }
  0x16   :  { %s670_s24 = smov [#allocation3]   ;;  %s671_s26 = smov [#allocation7]  }
  0x17   :  { %s25_s25 = sshll.u32 %s670_s24, 4  ;;  %s48_s27 = sshll.u32 %s671_s26, 4  ;;  %s26_s25 = int_to_ptr.vmem [resolvable:$true] %s25_s25  ;;  %s49_s27 = int_to_ptr.vmem [resolvable:$true] %s48_s27 }
  0x18   :  { %s595_s30 = scalar_lea.hbm %s821_s0, 128 }
  0x19   :  { %p596_p8 = scmp.ne.s32.totalorder %s821_s0, %s595_s30  ;;  %p599_p9 = scmp.lt.u32.totalorder %s595_s30, %s821_s0 }
  0x1b   :  { %p601_p10 = pnand %p599_p9, %p596_p8 }
  0x1d   :  { %604 = shalt.err (!%p601_p10)
}
  0x1e   :  { %s605_s1 = scalar_lea.vmem %s26_s25, 128  ;;  %p610_p12 = scmp.lt.s32.totalorder %s26_s25, %s26_s25 }
  0x1f   :  { %p606_p11 = scmp.ne.s32.totalorder %s26_s25, %s605_s1  ;;  %p611_p13 = scmp.lt.s32.totalorder %s605_s1, %s605_s1 }
  0x21   :  { %p612_p0 = por %p611_p13, %p610_p12 }
  0x23   :  { %p613_p1 = pnand %p612_p0, %p606_p11 }
  0x25   :  { %616 = shalt.err (!%p613_p1)
}
  0x26   :  { %28 = dma.hbm_to_vmem [thread:$0]  %s821_s0, 128, %s26_s25, [#allocation4]  }
  0x27   :  { %s617_s18 = scalar_lea.hbm %s824_s3, 2048 }
  0x28   :  { %p618_p2 = scmp.ne.s32.totalorder %s824_s3, %s617_s18  ;;  %p621_p3 = scmp.lt.u32.totalorder %s617_s18, %s824_s3 }
  0x2a   :  { %p623_p4 = pnand %p621_p3, %p618_p2 }
  0x2c   :  { %626 = shalt.err (!%p623_p4)
}
  0x2d   :  { %s627_s24 = scalar_lea.vmem %s49_s27, 2048  ;;  %p632_p6 = scmp.lt.s32.totalorder %s49_s27, %s49_s27 }
  0x2e   :  { %p628_p5 = scmp.ne.s32.totalorder %s49_s27, %s627_s24  ;;  %p633_p7 = scmp.lt.s32.totalorder %s627_s24, %s627_s24 }
  0x30   :  { %p634_p8 = por %p633_p7, %p632_p6 }
  0x32   :  { %p635_p9 = pnand %p634_p8, %p628_p5 }
  0x34   :  { %638 = shalt.err (!%p635_p9)
}
  0x35   :  { %54 = dma.hbm_to_vmem [thread:$0]  %s824_s3, 2048, %s49_s27, [#allocation6], %s668_s20, %s668_s20, %s669_s21  }
  0x36   :  { %s672_s26 = smov [#allocation8]   ;;  %s639_s10 = scalar_lea.hbm %s826_s5, 2048 }
  0x37   :  { %s62_s28 = sshll.u32 %s672_s26, 4  ;;  %p640_p10 = scmp.ne.s32.totalorder %s826_s5, %s639_s10  ;;  %s63_s28 = int_to_ptr.vmem [resolvable:$true] %s62_s28 }
  0x38   :  { %p643_p11 = scmp.lt.u32.totalorder %s639_s10, %s826_s5 }
  0x3a   :  { %p645_p12 = pnand %p643_p11, %p640_p10 }
  0x3c   :  { %648 = shalt.err (!%p645_p12)
}
  0x3d   :  { %s649_s12 = scalar_lea.vmem %s63_s28, 2048  ;;  %p654_p0 = scmp.lt.s32.totalorder %s63_s28, %s63_s28 }
  0x3e   :  { %p650_p13 = scmp.ne.s32.totalorder %s63_s28, %s649_s12  ;;  %p655_p1 = scmp.lt.s32.totalorder %s649_s12, %s649_s12 }
  0x40   :  { %p656_p2 = por %p655_p1, %p654_p0 }
  0x42   :  { %p657_p3 = pnand %p656_p2, %p650_p13 }
  0x44   :  { %660 = shalt.err (!%p657_p3)
}
  0x45   :  { %68 = dma.hbm_to_vmem [thread:$0]  %s826_s5, 2048, %s63_s28, [#allocation9], %s668_s20, %s668_s20, %s669_s21  }
  0x46   :  { %661 = dma.done.wait [#allocation4], 128  }
  0x47   :  { %662 = vsyncadd [#allocation4], 4294967168 }
  0x48   :  { %663 = dma.done.wait [#allocation6], 2304  }
  0x49   :  { %664 = vsyncadd [#allocation6], 4294964992 }
  0x4a   :  { %665 = dma.done.wait [#allocation9], 2048  }
  0x4b   :  { %666 = vsyncadd [#allocation9], 4294965248  ;;  %v673_v1 = vmov 0.0|0.0   ;;  %vm674_vm0 = vmmov 0   ;;  %v675_v2 = vmov 0.0   ;;  %v88_v3 = vld [vmem:[#allocation5] sm:$0xff] }
  0x4c   :  { %513 = vmatprep.subr.bf16.mxu0 %v673_v1  ;;  %440 = vmatprep.mubr.msk.f32.mxu0 %vm674_vm0, %v675_v2  ;;  %v89_v4 = vld [vmem:[#allocation5 + $0x8] sm:$0xff]  ;;  %v174_v6 = vld [vmem:[#allocation7] sm:$0xff]  ;;  %v175_v7 = vld [vmem:[#allocation7 + $0x8] sm:$0xff]  ;;  %vm97_vm1 = vcmask 130048   ;;  %vm384_vm5 = vcmask 7168  }
  0x4d   :  { %516 = vmatprep.subr.bf16.mxu1 %v673_v1  ;;  %475 = vmatprep.mubr.msk.f32.mxu1 %vm674_vm0, %v675_v2  ;;  %v514_v5 = vpack.c.bf16 %v89_v4, %v88_v3  ;;  %v176_v8 = vld [vmem:[#allocation7 + $0x10] sm:$0xff]  ;;  %v517_v9 = vpack.c.bf16 %v175_v7, %v174_v6  ;;  %v177_v10 = vld [vmem:[#allocation7 + $0x18] sm:$0xff]  ;;  %v87_v11 = vld [vmem:[#allocation3] sm:$0xff] }
  0x4e   :  { %v520_v12 = vpack.c.bf16 %v177_v10, %v176_v8  ;;  %v178_v13 = vld [vmem:[#allocation7 + $0x20] sm:$0xff]  ;;  %v179_v14 = vld [vmem:[#allocation7 + $0x28] sm:$0xff]  ;;  %v180_v16 = vld [vmem:[#allocation7 + $0x30] sm:$0xff] }
  0x4f   :  { %515 = vmatpush3.bf16.msra.mxu0 %v514_v5  ;;  %518 = vmatpush3.bf16.msra.mxu1 %v517_v9  ;;  %v523_v15 = vpack.c.bf16 %v179_v14, %v178_v13  ;;  %v181_v17 = vld [vmem:[#allocation7 + $0x38] sm:$0xff]  ;;  %v182_v19 = vld [vmem:[#allocation7 + $0x40] sm:$0xff]  ;;  %v183_v20 = vld [vmem:[#allocation7 + $0x48] sm:$0xff] }
  0x50   :  { %540 = vmatprep.subr.bf16.mxu0 %v673_v1  ;;  %519 = vmatprep.subr.bf16.mxu1 %v673_v1  ;;  %v526_v18 = vpack.c.bf16 %v181_v17, %v180_v16  ;;  %v529_v21 = vpack.c.bf16 %v183_v20, %v182_v19  ;;  %v184_v22 = vld [vmem:[#allocation7 + $0x50] sm:$0xff]  ;;  %v185_v23 = vld [vmem:[#allocation7 + $0x58] sm:$0xff]  ;;  %v186_v25 = vld [vmem:[#allocation7 + $0x60] sm:$0xff] }
  0x51   :  { %v532_v24 = vpack.c.bf16 %v185_v23, %v184_v22  ;;  %v187_v26 = vld [vmem:[#allocation7 + $0x68] sm:$0xff]  ;;  %v188_v28 = vld [vmem:[#allocation7 + $0x70] sm:$0xff]  ;;  %v189_v29 = vld [vmem:[#allocation7 + $0x78] sm:$0xff] }
  0x52   :  { %441 = vmatmul.mubr.msk.f32.vlgmr.msra.gmra.mrb[0].mxu0 %vm97_vm1, %v87_v11  ;;  %v535_v27 = vpack.c.bf16 %v187_v26, %v186_v25  ;;  %v538_v30 = vpack.c.bf16 %v189_v29, %v188_v28  ;;  %v270_v31 = vld [vmem:[#allocation8] sm:$0xff]  ;;  %v271_v32 = vld [vmem:[#allocation8 + $0x8] sm:$0xff]  ;;  %v272_v33 = vld [vmem:[#allocation8 + $0x10] sm:$0xff] }
  0x53   :  { %510 = vmatprep.mubr.msk.f32.mxu0 %vm674_vm0, %v675_v2  ;;  %521 = vmatpush3.bf16.msra.mxu1 %v520_v12  ;;  %v541_v34 = vpack.c.bf16 %v271_v32, %v270_v31  ;;  %v273_v35 = vld [vmem:[#allocation8 + $0x18] sm:$0xff]  ;;  %v274_v37 = vld [vmem:[#allocation8 + $0x20] sm:$0xff]  ;;  %v275_v38 = vld [vmem:[#allocation8 + $0x28] sm:$0xff] }
  0x54   :  { %522 = vmatprep.subr.bf16.mxu1 %v673_v1  ;;  %v544_v36 = vpack.c.bf16 %v273_v35, %v272_v33  ;;  %v547_v39 = vpack.c.bf16 %v275_v38, %v274_v37  ;;  %v276_v40 = vld [vmem:[#allocation8 + $0x30] sm:$0xff]  ;;  %v277_v41 = vld [vmem:[#allocation8 + $0x38] sm:$0xff]  ;;  %v278_v43 = vld [vmem:[#allocation8 + $0x40] sm:$0xff] }
  0x55   :  { %542 = vmatpush3.bf16.msra.mxu0 %v541_v34  ;;  %v550_v42 = vpack.c.bf16 %v277_v41, %v276_v40  ;;  %v279_v44 = vld [vmem:[#allocation8 + $0x48] sm:$0xff]  ;;  %v280_v46 = vld [vmem:[#allocation8 + $0x50] sm:$0xff]  ;;  %v281_v47 = vld [vmem:[#allocation8 + $0x58] sm:$0xff] }
  0x56   :  { %543 = vmatprep.subr.bf16.mxu0 %v673_v1  ;;  %v553_v45 = vpack.c.bf16 %v279_v44, %v278_v43  ;;  %v556_v48 = vpack.c.bf16 %v281_v47, %v280_v46  ;;  %v282_v49 = vld [vmem:[#allocation8 + $0x60] sm:$0xff]  ;;  %v283_v50 = vld [vmem:[#allocation8 + $0x68] sm:$0xff]  ;;  %v284_v58 = vld [vmem:[#allocation8 + $0x70] sm:$0xff] }
  0x57   :  { %524 = vmatpush3.bf16.msra.mxu1 %v523_v15  ;;  %v559_v51 = vpack.c.bf16 %v283_v50, %v282_v49  ;;  %v393_v52 = vld [vmem:[%s823_s2] ss:$0 sm:$0xff]  ;;  %v285_v59 = vld [vmem:[#allocation8 + $0x78] sm:$0xff] }
  0x58   :  { %525 = vmatprep.subr.bf16.mxu1 %v673_v1  ;;  %v562_v60 = vpack.c.bf16 %v285_v59, %v284_v58  ;;  %v395_v61 = vld [vmem:[%s825_s4] ss:$0 sm:$0xff] }
  0x59   :  { %545 = vmatpush3.bf16.msra.mxu0 %v544_v36  ;;  %v396_v3 = vld [vmem:[%s827_s6] ss:$0 sm:$0xff] }
  0x5a   :  { %546 = vmatprep.subr.bf16.mxu0 %v673_v1  ;;  %v397_v8 = vld [vmem:[%s828_s7] ss:$0 sm:$0xff] }
  0x5b   :  { %527 = vmatpush3.bf16.msra.mxu1 %v526_v18  ;;  %v398_v11 = vld [vmem:[#allocation2] ss:$0 sm:$0xff] }
  0x5c   :  { %528 = vmatprep.subr.bf16.mxu1 %v673_v1 }
  0x5d   :  { %548 = vmatpush3.bf16.msra.mxu0 %v547_v39 }
  0x5e   :  { %549 = vmatprep.subr.bf16.mxu0 %v673_v1 }
  0x5f   :  { %530 = vmatpush3.bf16.msra.mxu1 %v529_v21 }
  0x60   :  { %531 = vmatprep.subr.bf16.mxu1 %v673_v1 }
  0x61   :  { %551 = vmatpush3.bf16.msra.mxu0 %v550_v42 }
  0x62   :  { %552 = vmatprep.subr.bf16.mxu0 %v673_v1 }
  0x63   :  { %533 = vmatpush3.bf16.msra.mxu1 %v532_v24 }
  0x64   :  { %534 = vmatprep.subr.bf16.mxu1 %v673_v1 }
  0x65   :  { %554 = vmatpush3.bf16.msra.mxu0 %v553_v45 }
  0x66   :  { %555 = vmatprep.subr.bf16.mxu0 %v673_v1 }
  0x67   :  { %536 = vmatpush3.bf16.msra.mxu1 %v535_v27 }
  0x68   :  { %537 = vmatprep.subr.bf16.mxu1 %v673_v1 }
  0x69   :  { %557 = vmatpush3.bf16.msra.mxu0 %v556_v48 }
  0x6a   :  { %558 = vmatprep.subr.bf16.mxu0 %v673_v1 }
  0x6b   :  { %539 = vmatpush3.bf16.msra.mxu1 %v538_v30 }
  0x6d   :  { %560 = vmatpush3.bf16.msra.mxu0 %v559_v51 }
  0x6e   :  { %561 = vmatprep.subr.bf16.mxu0 %v673_v1 }
  0x71   :  { %563 = vmatpush3.bf16.msra.mxu0 %v562_v60 }
 0x125   :  { %v167_v53 = vpop.f32.mrb[0].mxu0 }
 0x126   :  { %v168_v54 = vadd.f32 %v393_v52, %v167_v53  ;;  %v442_v55 = vpop.f32.mrb[1].mxu0 }
 0x128   :  { %v172_v56 = vmul.f32 0.01, %v168_v54  ;;  %vm171_vm2 = vcmp.ge.f32.partialorder %v168_v54, 0.0 }
 0x12a   :  { %v173_v57 = vsel %vm171_vm2, %v168_v54, %v172_v56 }
 0x12b   :  { %476 = vmatmul.mubr.f32.vlgmr.msra.gmra.mrb[0].mxu1 %v173_v57 }
 0x1fe   :  { %v263_v62 = vpop.f32.mrb[0].mxu1 }
 0x1ff   :  { %v264_v63 = vadd.f32 %v395_v61, %v263_v62  ;;  %v477_v0 = vpop.f32.mrb[1].mxu1 }
 0x201   :  { %vm267_vm3 = vcmp.ge.f32.partialorder %v264_v63, 0.0  ;;  %v268_v1 = vmul.f32 0.01, %v264_v63 }
 0x203   :  { %v269_v2 = vsel %vm267_vm3, %v264_v63, %v268_v1 }
 0x204   :  { %511 = vmatmul.mubr.f32.vlgmr.msra.gmra.mrb[2].mxu0 %v269_v2 }
 0x2d7   :  { %v359_v4 = vpop.f32.mrb[2].mxu0 }
 0x2d8   :  { %v360_v5 = vadd.f32 %v396_v3, %v359_v4  ;;  %v512_v6 = vpop.f32.mrb[3].mxu0 }
 0x2da   :  { %v364_v7 = vmul.f32 0.01, %v360_v5  ;;  %vm363_vm4 = vcmp.ge.f32.partialorder %v360_v5, 0.0 }
 0x2dc   :  { %v365_v9 = vsel %vm363_vm4, %v360_v5, %v364_v7 }
 0x2dd   :  { %v373_v10 = vmul.f32 %v397_v8, %v365_v9 }
 0x2df   :  { %374 = vadd.xlane.f32.xlu0 %v373_v10 }
 0x36c   :  { %v375_v12 = vpop.xlane.xlu0 %374 }
 0x36d   :  { %v383_v13 = vadd.f32 %v398_v11, %v375_v12 }
 0x36f   :  { %385 = vst.msk [vmem:[%s830_s9] sm:$0xff] %vm384_vm5, %v383_v13 }
 0x370   :  { %390 = vsyncpa [#allocation4], 1 }
 0x371   :  { %391 = vsyncpa [#allocation6], 1 }
 0x372   :  { %392 = vsyncpa [#allocation9], 1 }

</bundles_post_ra>
